<compile_context>
chip_gen: v7x
topology: tpu7x:2x2x1
jax: 0.10.0
libtpu: 0.0.40
codegen_flags: <defaults>
</compile_context>

<pallas_src>
from functools import partial

import jax
import jax.numpy as jnp
from jax.experimental import pallas as pl
from jax.experimental.pallas import tpu as pltpu


def _round_up(x, m):
    return (x + m - 1) // m * m


_TM_SPLIT = 256                     # M tile when splitting across v7x TensorCores
_VMEM_LIMIT = 32 * 1024 * 1024      # far above this model's needs; safe on v5e/v6e/v7x


def _tensorcores_per_chip():
    # v7x has 2 TensorCores per chip (parallel grid axes are sharded across
    # them); v5e/v6e have 1, where splitting M only adds per-step overhead.
    try:
        kind = jax.devices()[0].device_kind.lower()
    except Exception:
        return 1
    return 2 if ("v7" in kind or "7x" in kind) else 1


_MULTI_TC = _tensorcores_per_chip() > 1


def _pick_m_tiling(m):
    mp = max(_round_up(m, 16), 16)          # bf16 sublane packing (16, 128)
    if _MULTI_TC and mp > _TM_SPLIT:
        mp = _round_up(mp, _TM_SPLIT)
        return mp, _TM_SPLIT
    return mp, mp


# ----------------------------- Pallas kernels ------------------------------

def _matmul_kernel(*refs, use_pro, out_relu):
    """y = [relu]( dot( [relu(a*ps+pb)], b ) * es + eb ); single K/N block."""
    if use_pro:
        a_ref, b_ref, pro_ref, epi_ref, o_ref = refs
    else:
        a_ref, b_ref, epi_ref, o_ref = refs
    a = a_ref[...]
    if use_pro:
        # Preceding BatchNorm+ReLU fused on the LHS tile (bf16 VALU path).
        a = jnp.maximum(a * pro_ref[0:1, :] + pro_ref[1:2, :], 0).astype(a_ref.dtype)
    y = jnp.dot(a, b_ref[...], preferred_element_type=jnp.float32)
    y = y * epi_ref[0:1, :] + epi_ref[1:2, :]
    if out_relu:
        y = jnp.maximum(y, 0.0)
    o_ref[...] = y.astype(o_ref.dtype)


def matmul_fused(a, b, *, prologue=None, epilogue=None, out_relu=False,
                 out_dtype=jnp.bfloat16):
    """(M,K)@(K,N) with fused per-channel prologue(BN+ReLU)/epilogue affines.

    bf16 MXU operands, f32 accumulation.  K and N stay single full blocks (no
    accumulator scratch, no reduction grid axis); M is padded to a multiple of
    16 and split at 256 only on multi-TensorCore chips.
    """
    M, K = a.shape
    K2, N = b.shape
    assert K == K2
    # TODO(synk): add a K-tiled accumulator path for very large channel counts.
    assert K <= 2048 and N <= 512, (K, N)

    a = a.astype(jnp.bfloat16)
    b = b.astype(jnp.bfloat16)

    Mp, tm = _pick_m_tiling(M)
    if Mp != M:
        a = jnp.pad(a, ((0, Mp - M), (0, 0)))

    es, eb = epilogue if epilogue is not None else (None, None)
    es = jnp.ones((N,), jnp.float32) if es is None else jnp.asarray(es, jnp.float32)
    eb = jnp.zeros((N,), jnp.float32) if eb is None else jnp.asarray(eb, jnp.float32)
    epi = jnp.stack([es, eb])                                    # (2, N) f32

    use_pro = prologue is not None
    args = [a, b]
    in_specs = [pl.BlockSpec((tm, K), lambda i: (i, 0)),
                pl.BlockSpec((K, N), lambda i: (0, 0))]
    if use_pro:
        ps, pb = prologue
        pro = jnp.stack([jnp.asarray(ps, jnp.float32),
                         jnp.asarray(pb, jnp.float32)]).astype(jnp.bfloat16)
        args.append(pro)                                         # (2, K) bf16
        in_specs.append(pl.BlockSpec((2, K), lambda i: (0, 0)))
    args.append(epi)
    in_specs.append(pl.BlockSpec((2, N), lambda i: (0, 0)))

    out = pl.pallas_call(
        partial(_matmul_kernel, use_pro=use_pro, out_relu=out_relu),
        out_shape=jax.ShapeDtypeStruct((Mp, N), out_dtype),
        grid=(Mp // tm,),
        in_specs=in_specs,
        out_specs=pl.BlockSpec((tm, N), lambda i: (i, 0)),
        compiler_params=pltpu.CompilerParams(
            dimension_semantics=("parallel",),
            vmem_limit_bytes=_VMEM_LIMIT),
    )(*args)
    return out[:M] if Mp != M else out


def _dense_layer_kernel(a_ref, w1_ref, w2_ref, p1_ref, p2_ref, m_ref, o_ref,
                        *, cin, mid):
    """One DenseLayer: relu(bn1(x)) @ W1 -> relu(bn2(.)) -> 3x3 conv, fused.

    The 3x3 conv is computed as nine shifted 1x1 products; the bottleneck
    activation is recomputed per tap (trivial MXU flops) so it never leaves
    VMEM.  `m_ref` zeroes taps that fall in the conv's zero-padding.
    """
    p1s = p1_ref[0:1, :]
    p1b = p1_ref[1:2, :]
    p2s = p2_ref[0:1, :]
    p2b = p2_ref[1:2, :]
    acc = None
    for j in range(9):
        xa = a_ref[:, j * cin:(j + 1) * cin]                     # (tm, cin) bf16
        xa = jnp.maximum(xa * p1s + p1b, 0)                      # BN1 + ReLU
        hj = jnp.dot(xa.astype(jnp.bfloat16), w1_ref[...],
                     preferred_element_type=jnp.float32)         # 1x1 conv
        hj = jnp.maximum(hj * p2s + p2b, 0.0)                    # BN2 + ReLU
        hj = hj * m_ref[:, j:j + 1]                              # zero padded taps
        part = jnp.dot(hj.astype(jnp.bfloat16),
                       w2_ref[j * mid:(j + 1) * mid, :],
                       preferred_element_type=jnp.float32)       # 3x3 tap
        acc = part if acc is None else acc + part
    o_ref[...] = acc.astype(o_ref.dtype)


def _pool_kernel(p_ref, s_ref, b_ref, o_ref, *, op, affine, relu):
    x = p_ref[...].astype(jnp.float32)                           # (tm, KK, C)
    if affine:
        x = x * s_ref[...] + b_ref[...]                          # per-channel BN
        if relu:
            x = jnp.maximum(x, 0.0)
    if op == "max":
        r = jnp.max(x, axis=1)
    else:
        r = jnp.mean(x, axis=1)
    o_ref[...] = r.astype(o_ref.dtype)


def window_reduce(patches, op, *, affine=None, relu=False,
                  out_dtype=jnp.bfloat16):
    """(M, KK, C) -> (M, C) reducing over the window axis.

    Optional per-channel affine(+ReLU) applied before the reduction (fuses the
    final BatchNorm+ReLU into the global-average-pool kernel)."""
    M, KK, C = patches.shape
    if M <= 1024:
        Mp, tm = M, M
    else:
        Mp, tm = _round_up(M, 512), 512
        patches = jnp.pad(patches, ((0, Mp - M), (0, 0), (0, 0)))
    if affine is not None:
        s, b = affine
    else:
        s = jnp.ones((C,), jnp.float32)
        b = jnp.zeros((C,), jnp.float32)
    s = jnp.asarray(s, jnp.float32).reshape(1, 1, C)
    b = jnp.asarray(b, jnp.float32).reshape(1, 1, C)

    out = pl.pallas_call(
        partial(_pool_kernel, op=op, affine=affine is not None, relu=relu),
        out_shape=jax.ShapeDtypeStruct((Mp, C), out_dtype),
        grid=(Mp // tm,),
        in_specs=[pl.BlockSpec((tm, KK, C), lambda i: (i, 0, 0)),
                  pl.BlockSpec((1, 1, C), lambda i: (0, 0, 0)),
                  pl.BlockSpec((1, 1, C), lambda i: (0, 0, 0))],
        out_specs=pl.BlockSpec((tm, C), lambda i: (i, 0)),
        compiler_params=pltpu.CompilerParams(
            dimension_semantics=("parallel",),
            vmem_limit_bytes=_VMEM_LIMIT),
    )(patches, s, b)
    return out[:M] if Mp != M else out


# --------------------------- JAX glue (layout only) -------------------------

def _extract_patches(x, kh, kw, stride):
    """x: (N, H, W, C) (already padded) -> (N, Ho, Wo, kh*kw, C)."""
    N, H, W, C = x.shape
    Ho = (H - kh) // stride + 1
    Wo = (W - kw) // stride + 1
    cols = []
    for i in range(kh):
        for j in range(kw):
            cols.append(x[:, i:i + stride * Ho:stride,
                          j:j + stride * Wo:stride, :])
    return jnp.stack(cols, axis=3), Ho, Wo


def conv2d_fused(x, w, stride, pad, *, prologue=None, epilogue=None,
                 out_relu=False):
    """x: NHWC bf16, w: PyTorch layout (Cout, Cin, KH, KW), bias-free conv.

    Preceding BN+ReLU fused as prologue, following BN(+ReLU) as epilogue."""
    cout, cin, kh, kw = w.shape
    N = x.shape[0]
    if kh == 1 and kw == 1 and stride == 1 and pad == 0:
        _, H, W, _ = x.shape
        a = x.reshape(N * H * W, cin)
        Ho, Wo = H, W
    else:
        if pad > 0:
            x = jnp.pad(x, ((0, 0), (pad, pad), (pad, pad), (0, 0)))
        patches, Ho, Wo = _extract_patches(x, kh, kw, stride)
        a = patches.reshape(N * Ho * Wo, kh * kw * cin)
    w_mat = jnp.transpose(w, (2, 3, 1, 0)).reshape(kh * kw * cin, cout)
    if prologue is not None and kh * kw > 1:
        ps, pb = prologue
        prologue = (jnp.tile(jnp.asarray(ps, jnp.float32), kh * kw),
                    jnp.tile(jnp.asarray(pb, jnp.float32), kh * kw))
    y = matmul_fused(a, w_mat, prologue=prologue, epilogue=epilogue,
                     out_relu=out_relu)
    return y.reshape(N, Ho, Wo, cout)


def pool2d(x, k, stride, pad, op):
    if pad > 0:
        fill = -jnp.inf if op == "max" else 0.0
        x = jnp.pad(x, ((0, 0), (pad, pad), (pad, pad), (0, 0)),
                    constant_values=fill)
    N, _, _, C = x.shape
    patches, Ho, Wo = _extract_patches(x, k, k, stride)
    y = window_reduce(patches.reshape(N * Ho * Wo, k * k, C), op)
    return y.reshape(N, Ho, Wo, C)


def _bn_scale_shift(bn, eps=1e-5):
    scale = bn["weight"] / jnp.sqrt(bn["var"] + eps)
    shift = bn["bias"] - bn["mean"] * scale
    return scale, shift


def _conv3x3_mask(B, H, W):
    """(B*H*W, 9) validity mask: 0 where a 3x3/pad=1 tap is in the padding."""
    pi = jnp.arange(H)[:, None]
    qi = jnp.arange(W)[None, :]
    cols = []
    for i in range(3):
        for j in range(3):
            v = ((pi + i - 1 >= 0) & (pi + i - 1 < H) &
                 (qi + j - 1 >= 0) & (qi + j - 1 < W))
            cols.append(jnp.broadcast_to(v, (H, W)))
    m = jnp.stack(cols, axis=-1).astype(jnp.float32)              # (H, W, 9)
    return jnp.broadcast_to(m[None], (B, H, W, 9)).reshape(B * H * W, 9)


# ------------------------------ DenseNet model ------------------------------

def dense_layer_fused(x, p, mask):
    """One DenseLayer as a single pallas_call; the bottleneck stays in VMEM."""
    B, H, W, cin = x.shape
    mid = p["conv1_w"].shape[0]
    growth = p["conv2_w"].shape[0]
    M = B * H * W

    xp = jnp.pad(x, ((0, 0), (1, 1), (1, 1), (0, 0)))
    patches, Ho, Wo = _extract_patches(xp, 3, 3, 1)               # (B,H,W,9,cin)
    a = patches.reshape(M, 9 * cin).astype(jnp.bfloat16)

    w1 = jnp.transpose(p["conv1_w"], (2, 3, 1, 0)).reshape(cin, mid)
    w1 = w1.astype(jnp.bfloat16)
    w2 = jnp.transpose(p["conv2_w"], (2, 3, 1, 0)).reshape(9 * mid, growth)
    w2 = w2.astype(jnp.bfloat16)
    s1, b1 = _bn_scale_shift(p["bn1"])
    s2, b2 = _bn_scale_shift(p["bn2"])
    p1 = jnp.stack([s1, b1]).astype(jnp.bfloat16)                 # (2, cin)
    p2 = jnp.stack([s2, b2]).astype(jnp.float32)                  # (2, mid)

    Mp, tm = _pick_m_tiling(M)
    if Mp != M:
        a = jnp.pad(a, ((0, Mp - M), (0, 0)))
        mask = jnp.pad(mask, ((0, Mp - M), (0, 0)))

    new = pl.pallas_call(
        partial(_dense_layer_kernel, cin=cin, mid=mid),
        out_shape=jax.ShapeDtypeStruct((Mp, growth), jnp.bfloat16),
        grid=(Mp // tm,),
        in_specs=[pl.BlockSpec((tm, 9 * cin), lambda i: (i, 0)),
                  pl.BlockSpec((cin, mid), lambda i: (0, 0)),
                  pl.BlockSpec((9 * mid, growth), lambda i: (0, 0)),
                  pl.BlockSpec((2, cin), lambda i: (0, 0)),
                  pl.BlockSpec((2, mid), lambda i: (0, 0)),
                  pl.BlockSpec((tm, 9), lambda i: (i, 0))],
        out_specs=pl.BlockSpec((tm, growth), lambda i: (i, 0)),
        compiler_params=pltpu.CompilerParams(
            dimension_semantics=("parallel",),
            vmem_limit_bytes=_VMEM_LIMIT),
    )(a, w1, w2, p1, p2, mask)
    if Mp != M:
        new = new[:M]
    new = new.reshape(B, H, W, growth)
    # dropout_p > 0 but eval mode -> identity
    # TODO(synk): per-layer concat is O(L^2) HBM; preallocated aliased channel
    # buffer would make it O(L).
    return jnp.concatenate([x, new], axis=-1)


def transition_forward(x, p):
    # BN+ReLU -> 1x1 conv -> 2x2 avg pool, folded into a single 2x2/stride-2
    # conv (avg-pool of a 1x1 conv == conv with w/4 at each of the 4 taps).
    w_pool = jnp.tile(p["conv_w"], (1, 1, 2, 2)) * 0.25
    return conv2d_fused(x, w_pool, stride=2, pad=0,
                        prologue=_bn_scale_shift(p["bn"]))


def densenet_forward(params, x_nchw):
    x = jnp.transpose(x_nchw, (0, 2, 3, 1)).astype(jnp.bfloat16)  # NCHW->NHWC

    # first_conv: Conv7x7/s2/p3 -> BN -> ReLU (fused epilogue) -> MaxPool3x3/s2/p1
    stem = params["stem"]
    x = conv2d_fused(x, stem["conv_w"], stride=2, pad=3,
                     epilogue=_bn_scale_shift(stem["bn"]), out_relu=True)
    x = pool2d(x, k=3, stride=2, pad=1, op="max")

    # dense blocks + transitions
    for item in params["features"]:
        if item["kind"] == "dense_block":
            B, H, W, _ = x.shape
            mask = _conv3x3_mask(B, H, W)      # shared by all layers of the block
            for lp in item["layers"]:
                x = dense_layer_fused(x, lp, mask)
        else:
            x = transition_forward(x, item)

    # final BN + ReLU fused into the global-average-pool kernel
    B, H, W, C = x.shape
    g = window_reduce(x.reshape(B, H * W, C), "mean",
                      affine=_bn_scale_shift(params["final_bn"]), relu=True)

    # Head: concat([avgpool, avgpool]) -> BN1d -> Dropout(id) -> Linear -> ReLU
    #       -> BN1d -> Dropout(id) -> classifier Linear.
    # The duplicate-concat and both BN1d affines fold into the Linear /
    # classifier weights (no ReLU precedes them), so no concat / BN kernels run.
    db = params["dropout_block"]
    nf = C
    s1, h1 = _bn_scale_shift(db["bn1"])                           # (2*nf,)
    wl_f32 = db["lin_w"].astype(jnp.float32)                      # (nf, 2*nf)
    wl = wl_f32 * s1[None, :]
    w_eff = wl[:, :nf] + wl[:, nf:]                               # feat = [g, g]
    shift1 = db["lin_b"] + wl_f32 @ h1
    h = matmul_fused(g, w_eff.T, epilogue=(None, shift1), out_relu=True)

    s2, h2 = _bn_scale_shift(db["bn2"])                           # (nf,)
    cl = params["classifier"]
    wc = cl["w"].astype(jnp.float32)                              # (ncls, nf)
    wc_eff = wc * s2[None, :]
    shift2 = cl["b"] + wc @ h2
    return matmul_fused(h, wc_eff.T, epilogue=(None, shift2),
                        out_relu=False, out_dtype=jnp.float32)


def init_params(key, num_classes=5, growth_rate=8, block_config=(2, 2),
                num_init_features=16, bottleneck_size=2):
    keys = iter(jax.random.split(key, 64))

    def conv_w(cout, cin, kh, kw):
        fan_in = cin * kh * kw
        return (jax.random.normal(next(keys), (cout, cin, kh, kw), jnp.float32)
                * jnp.sqrt(2.0 / fan_in))          # kaiming-normal-like

    def lin_w(cout, cin):
        return (jax.random.normal(next(keys), (cout, cin), jnp.float32)
                * jnp.sqrt(1.0 / cin))

    def bn(c):
        # Non-trivial running statistics so the fused BN/ReLU paths are
        # exercised numerically (eval-mode BatchNorm semantics).
        k1, k2, k3, k4 = jax.random.split(next(keys), 4)
        return dict(weight=1.0 + 0.1 * jax.random.normal(k1, (c,), jnp.float32),
                    bias=0.1 * jax.random.normal(k2, (c,), jnp.float32),
                    mean=0.1 * jax.random.normal(k3, (c,), jnp.float32),
                    var=1.0 + 0.2 * jax.random.uniform(k4, (c,), jnp.float32))

    params = {"stem": dict(conv_w=conv_w(num_init_features, 1, 7, 7),
                           bn=bn(num_init_features))}
    features = []
    nf = num_init_features
    for i, nl in enumerate(block_config):
        layers = []
        for j in range(nl):
            cin = nf + j * growth_rate
            mid = bottleneck_size * growth_rate
            layers.append(dict(bn1=bn(cin),
                               conv1_w=conv_w(mid, cin, 1, 1),
                               bn2=bn(mid),
                               conv2_w=conv_w(growth_rate, mid, 3, 3)))
        features.append(dict(kind="dense_block", layers=layers))
        nf = nf + nl * growth_rate
        if i != len(block_config) - 1:
            features.append(dict(kind="transition", bn=bn(nf),
                                 conv_w=conv_w(nf // 2, nf, 1, 1)))
            nf = nf // 2
    params["features"] = features
    params["final_bn"] = bn(nf)
    params["dropout_block"] = dict(bn1=bn(2 * nf),
                                   lin_w=lin_w(nf, 2 * nf),
                                   lin_b=jnp.zeros((nf,), jnp.float32),
                                   bn2=bn(nf))
    params["classifier"] = dict(w=lin_w(num_classes, nf),
                                b=jnp.zeros((num_classes,), jnp.float32))
    return params


if __name__ == "__main__":
    key = jax.random.PRNGKey(0)
    pkey, xkey = jax.random.split(key)

    num_classes = 5
    params = init_params(pkey, num_classes=num_classes, growth_rate=8,
                         block_config=(2, 2), num_init_features=16,
                         bottleneck_size=2)

    # PyTorch-style NCHW input: single-channel "image".
    x = jax.random.normal(xkey, (2, 1, 32, 32), jnp.float32)

    logits = densenet_forward(params, x)
    logits = jax.block_until_ready(logits)

    assert logits.shape == (2, num_classes), logits.shape
    assert bool(jnp.all(jnp.isfinite(logits)))
    print("KERNEL_OK")
</pallas_src>

<mosaic_0001>
module attributes {stable_mosaic.version = 11 : i64} {
  func.func @_matmul_kernel(%arg0: i32, %arg1: memref<512x49xbf16, #tpu.memory_space<vmem>>, %arg2: memref<49x16xbf16, #tpu.memory_space<vmem>>, %arg3: memref<2x16xf32, #tpu.memory_space<vmem>>, %arg4: memref<512x16xbf16, #tpu.memory_space<vmem>>) attributes {dimension_semantics = [#tpu.dimension_semantics<parallel>], iteration_bounds = array<i64: 1>, scalar_prefetch = 0 : i64, scratch_operands = 0 : i64, tpu.core_type = #tpu.core_type<tc>, window_params = [{transform_indices = @transform_0, window_bounds = array<i64: 512, 49>}, {pipeline_mode = #tpu.pipeline_mode<synchronous>, transform_indices = @transform_1, window_bounds = array<i64: 49, 16>}, {pipeline_mode = #tpu.pipeline_mode<synchronous>, transform_indices = @transform_2, window_bounds = array<i64: 2, 16>}, {transform_indices = @transform_3, window_bounds = array<i64: 512, 16>}]} {
    %c0 = arith.constant 0 : index
    %c0_0 = arith.constant 0 : index
    %0 = vector.load %arg1[%c0, %c0_0] : memref<512x49xbf16, #tpu.memory_space<vmem>>, vector<512x49xbf16>
    %c0_1 = arith.constant 0 : index
    %c0_2 = arith.constant 0 : index
    %1 = vector.load %arg2[%c0_1, %c0_2] : memref<49x16xbf16, #tpu.memory_space<vmem>>, vector<49x16xbf16>
    %cst = arith.constant dense<0.000000e+00> : vector<512x16xf32>
    %2 = tpu.matmul %0, %1, %cst {dimension_numbers = #tpu.dot_dimension_numbers<[1], [0], [0], [1], [0, 0, 1, 1], [], []>} : vector<512x49xbf16>, vector<49x16xbf16>, vector<512x16xf32> -> vector<512x16xf32>
    %c0_3 = arith.constant 0 : index
    %c0_4 = arith.constant 0 : index
    %3 = vector.load %arg3[%c0_3, %c0_4] : memref<2x16xf32, #tpu.memory_space<vmem>>, vector<1x16xf32>
    %4 = vector.broadcast %3 : vector<1x16xf32> to vector<512x16xf32>
    %5 = arith.mulf %2, %4 : vector<512x16xf32>
    %c1 = arith.constant 1 : index
    %c0_5 = arith.constant 0 : index
    %6 = vector.load %arg3[%c1, %c0_5] : memref<2x16xf32, #tpu.memory_space<vmem>>, vector<1x16xf32>
    %7 = vector.broadcast %6 : vector<1x16xf32> to vector<512x16xf32>
    %8 = arith.addf %5, %7 : vector<512x16xf32>
    %cst_6 = arith.constant 0.000000e+00 : f32
    %9 = vector.broadcast %cst_6 : f32 to vector<512x16xf32>
    %10 = arith.maximumf %8, %9 : vector<512x16xf32>
    %11 = arith.truncf %10 : vector<512x16xf32> to vector<512x16xbf16>
    %c0_7 = arith.constant 0 : index
    %c0_8 = arith.constant 0 : index
    %12 = vector.load %arg4[%c0_7, %c0_8] : memref<512x16xbf16, #tpu.memory_space<vmem>>, vector<512x16xbf16>
    tpu.vector_store %arg4[%c0_7, %c0_8], %11 {strides = array<i32>} : memref<512x16xbf16, #tpu.memory_space<vmem>>, vector<512x16xbf16>,
    return
  }
  func.func @transform_0(%arg0: i32) -> (i32, i32) {
    %c0_i32 = arith.constant 0 : i32
    %c0_i32_0 = arith.constant 0 : i32
    return %arg0, %c0_i32 : i32, i32
  }
  func.func @transform_1(%arg0: i32) -> (i32, i32) {
    %c0_i32 = arith.constant 0 : i32
    %c0_i32_0 = arith.constant 0 : i32
    %c0_i32_1 = arith.constant 0 : i32
    return %c0_i32, %c0_i32_0 : i32, i32
  }
  func.func @transform_2(%arg0: i32) -> (i32, i32) {
    %c0_i32 = arith.constant 0 : i32
    %c0_i32_0 = arith.constant 0 : i32
    %c0_i32_1 = arith.constant 0 : i32
    return %c0_i32, %c0_i32_0 : i32, i32
  }
  func.func @transform_3(%arg0: i32) -> (i32, i32) {
    %c0_i32 = arith.constant 0 : i32
    %c0_i32_0 = arith.constant 0 : i32
    return %arg0, %c0_i32 : i32, i32
  }
}

</mosaic_0001>

<bundles_post_ra>
// kernel: tpu_custom_call.1
= control target key start
LH: loop header
LB: loop body
LE: loop exit
PB: predicated region body
PF: predicated region fallthrough
CT: control target
= control target key end

     0   :  { %vm364_vm0 = vcmask 1040384   ;;  %vm267_vm1 = vcmask 400384   ;;  %v1537_v5 = vmov 0   ;;  %vm1117_vm2 = vcmask 125952   ;;  %s2092_s1 = inlined_call_operand.vmem [shape: bf16[49,16], index: 1, kind: input, shape index: {}]   ;;  %s2093_s0 = inlined_call_operand.vmem [shape: bf16[512,49], index: 0, kind: input, shape index: {}]   ;;  %s2094_s2 = inlined_call_operand.vmem [shape: f32[2,16], index: 2, kind: input, shape index: {}]   ;;  %s2095_s3 = inlined_call_operand.vmem [shape: bf16[512,16], index: 3, kind: output, shape index: {}]  }
   0x1   :  { %v1501_v0 = vld [vmem:[%s2092_s1] sm:$0xff]   ;;  %v1502_v1 = vld [vmem:[%s2092_s1 + $0x8] sm:$0xff]   ;;  %v1503_v2 = vld [vmem:[%s2092_s1 + $0x10] sm:$0xff]   ;;  %v366_v6 = vsel %vm364_vm0, 65535, %v1537_v5 }
   0x2   :  { %1420 = vmatprep.subr.bf16.mxu0 %v1501_v0  ;;  %1492 = vmatprep.subr.bf16.mxu1 %v1501_v0  ;;  %v1504_v3 = vld [vmem:[%s2092_s1 + $0x18] ss:$0 sps:$4 sm:$0x11]   ;;  %v1505_v4 = vld [vmem:[%s2093_s0] sm:$0xff]   ;;  %v1507_v9 = vld [vmem:[%s2093_s0 + $0x8] sm:$0xff]  }
   0x3   :  { %1421 = vmatpush3.bf16.msra.mxu0 %v1501_v0  ;;  %1496 = vmatpush3.bf16.msra.mxu1 %v1501_v0  ;;  %v1506_v7 = vld [vmem:[%s2093_s0 + $0x80] sm:$0xff]   ;;  %v368_v8 = vand.u32 %v1504_v3, %v366_v6  ;;  %v1508_v10 = vld [vmem:[%s2093_s0 + $0x88] sm:$0xff]   ;;  %v1509_v11 = vld [vmem:[%s2093_s0 + $0x10] sm:$0xff]  }
   0x4   :  { %1422 = vmatprep.subr.bf16.mxu0 %v1502_v1  ;;  %1493 = vmatprep.subr.bf16.mxu1 %v1502_v1  ;;  %v1510_v12 = vld [vmem:[%s2093_s0 + $0x90] sm:$0xff]   ;;  %v1511_v13 = vld [vmem:[%s2093_s0 + $0x18] sm:$0xff]   ;;  %v1513_v15 = vld [vmem:[%s2093_s0 + $0x20] sm:$0xff]  }
   0x5   :  { %1428 = vmatprep.mubr.msk.bf16.mxu0 %vm267_vm1, %v1505_v4  ;;  %1460 = vmatprep.mubr.msk.bf16.mxu1 %vm267_vm1, %v1506_v7  ;;  %v1512_v14 = vld [vmem:[%s2093_s0 + $0x98] sm:$0xff]   ;;  %v1514_v16 = vld [vmem:[%s2093_s0 + $0xa0] sm:$0xff]   ;;  %v1515_v17 = vld [vmem:[%s2093_s0 + $0x28] sm:$0xff]  }
   0x6   :  { %v1516_v18 = vld [vmem:[%s2093_s0 + $0xa8] sm:$0xff]   ;;  %v1517_v19 = vld [vmem:[%s2093_s0 + $0x30] sm:$0xff]   ;;  %v1519_v21 = vld [vmem:[%s2093_s0 + $0x38] sm:$0xff]  }
   0x7   :  { %1423 = vmatpush3.bf16.msra.mxu0 %v1502_v1  ;;  %1497 = vmatpush3.bf16.msra.mxu1 %v1502_v1  ;;  %v1518_v20 = vld [vmem:[%s2093_s0 + $0xb0] sm:$0xff]   ;;  %v1520_v22 = vld [vmem:[%s2093_s0 + $0xb8] sm:$0xff]   ;;  %v1521_v23 = vld [vmem:[%s2093_s0 + $0x40] sm:$0xff]  }
   0x8   :  { %1424 = vmatprep.subr.bf16.mxu0 %v1503_v2  ;;  %1494 = vmatprep.subr.bf16.mxu1 %v1503_v2  ;;  %v1522_v24 = vld [vmem:[%s2093_s0 + $0xc0] sm:$0xff]   ;;  %v1523_v25 = vld [vmem:[%s2093_s0 + $0x48] sm:$0xff]   ;;  %v1525_v27 = vld [vmem:[%s2093_s0 + $0x50] sm:$0xff]  }
   0x9   :  { %v1524_v26 = vld [vmem:[%s2093_s0 + $0xc8] sm:$0xff]   ;;  %v1526_v28 = vld [vmem:[%s2093_s0 + $0xd0] sm:$0xff]   ;;  %v1527_v29 = vld [vmem:[%s2093_s0 + $0x58] sm:$0xff]  }
   0xa   :  { %v1528_v30 = vld [vmem:[%s2093_s0 + $0xd8] sm:$0xff]   ;;  %v1529_v31 = vld [vmem:[%s2093_s0 + $0x60] sm:$0xff]   ;;  %v1531_v33 = vld [vmem:[%s2093_s0 + $0x68] sm:$0xff]  }
   0xb   :  { %1425 = vmatpush3.bf16.msra.mxu0 %v1503_v2  ;;  %1498 = vmatpush3.bf16.msra.mxu1 %v1503_v2  ;;  %v1530_v32 = vld [vmem:[%s2093_s0 + $0xe0] sm:$0xff]   ;;  %v1532_v34 = vld [vmem:[%s2093_s0 + $0xe8] sm:$0xff]   ;;  %v1533_v35 = vld [vmem:[%s2093_s0 + $0x70] sm:$0xff]  }
   0xc   :  { %1426 = vmatprep.subr.bf16.mxu0 %v368_v8  ;;  %1495 = vmatprep.subr.bf16.mxu1 %v368_v8  ;;  %v1534_v36 = vld [vmem:[%s2093_s0 + $0xf0] sm:$0xff]   ;;  %v1535_v37 = vld [vmem:[%s2093_s0 + $0x78] sm:$0xff]   ;;  %v1701_v39 = vld [vmem:[%s2094_s2] ss:$0 sm:$0xff] }
   0xd   :  { %v1536_v38 = vld [vmem:[%s2093_s0 + $0xf8] sm:$0xff]   ;;  %v1706_v41 = vld [vmem:[%s2094_s2 + $0x1] ss:$0 sm:$0xff] }
   0xf   :  { %1427 = vmatpush3.bf16.msra.mxu0 %v368_v8  ;;  %1499 = vmatpush3.bf16.msra.mxu1 %v368_v8 }
  0x12   :  { %1429 = vmatmul.mubr.msk.bf16.vlgmr.msra.gmra.mrb[0].mxu0 %vm267_vm1, %v1507_v9  ;;  %1461 = vmatmul.mubr.msk.bf16.vlgmr.msra.gmra.mrb[0].mxu1 %vm267_vm1, %v1508_v10 }
  0x13   :  { %1432 = vmatprep.mubr.msk.bf16.mxu0 %vm267_vm1, %v1509_v11  ;;  %1464 = vmatprep.mubr.msk.bf16.mxu1 %vm267_vm1, %v1510_v12 }
  0x1a   :  { %1433 = vmatmul.mubr.msk.bf16.gmra.mrb[4].mxu0 %vm267_vm1, %v1511_v13  ;;  %1465 = vmatmul.mubr.msk.bf16.gmra.mrb[4].mxu1 %vm267_vm1, %v1512_v14 }
  0x1b   :  { %1436 = vmatprep.mubr.msk.bf16.mxu0 %vm267_vm1, %v1513_v15  ;;  %1468 = vmatprep.mubr.msk.bf16.mxu1 %vm267_vm1, %v1514_v16 }
  0x22   :  { %1437 = vmatmul.mubr.msk.bf16.gmra.mrb[8].mxu0 %vm267_vm1, %v1515_v17  ;;  %1469 = vmatmul.mubr.msk.bf16.gmra.mrb[8].mxu1 %vm267_vm1, %v1516_v18 }
  0x23   :  { %1440 = vmatprep.mubr.msk.bf16.mxu0 %vm267_vm1, %v1517_v19  ;;  %1472 = vmatprep.mubr.msk.bf16.mxu1 %vm267_vm1, %v1518_v20 }
  0x2a   :  { %1441 = vmatmul.mubr.msk.bf16.gmra.mrb[12].mxu0 %vm267_vm1, %v1519_v21  ;;  %1473 = vmatmul.mubr.msk.bf16.gmra.mrb[12].mxu1 %vm267_vm1, %v1520_v22 }
  0x2b   :  { %1444 = vmatprep.mubr.msk.bf16.mxu0 %vm267_vm1, %v1521_v23  ;;  %1476 = vmatprep.mubr.msk.bf16.mxu1 %vm267_vm1, %v1522_v24 }
  0x32   :  { %1445 = vmatmul.mubr.msk.bf16.gmra.mrb[16].mxu0 %vm267_vm1, %v1523_v25  ;;  %1477 = vmatmul.mubr.msk.bf16.gmra.mrb[16].mxu1 %vm267_vm1, %v1524_v26 }
  0x33   :  { %1448 = vmatprep.mubr.msk.bf16.mxu0 %vm267_vm1, %v1525_v27  ;;  %1480 = vmatprep.mubr.msk.bf16.mxu1 %vm267_vm1, %v1526_v28 }
  0x3a   :  { %1449 = vmatmul.mubr.msk.bf16.gmra.mrb[20].mxu0 %vm267_vm1, %v1527_v29  ;;  %1481 = vmatmul.mubr.msk.bf16.gmra.mrb[20].mxu1 %vm267_vm1, %v1528_v30 }
  0x3b   :  { %1452 = vmatprep.mubr.msk.bf16.mxu0 %vm267_vm1, %v1529_v31  ;;  %1484 = vmatprep.mubr.msk.bf16.mxu1 %vm267_vm1, %v1530_v32 }
  0x42   :  { %1453 = vmatmul.mubr.msk.bf16.gmra.mrb[24].mxu0 %vm267_vm1, %v1531_v33  ;;  %1485 = vmatmul.mubr.msk.bf16.gmra.mrb[24].mxu1 %vm267_vm1, %v1532_v34 }
  0x43   :  { %1456 = vmatprep.mubr.msk.bf16.mxu0 %vm267_vm1, %v1533_v35  ;;  %1488 = vmatprep.mubr.msk.bf16.mxu1 %vm267_vm1, %v1534_v36 }
  0x4a   :  { %1457 = vmatmul.mubr.msk.bf16.gmra.mrb[28].mxu0 %vm267_vm1, %v1535_v37  ;;  %1489 = vmatmul.mubr.msk.bf16.gmra.mrb[28].mxu1 %vm267_vm1, %v1536_v38 }
  0xe5   :  { %v1430_v40 = vpop.f32.mrb[0].mxu0  ;;  %v1462_v42 = vpop.f32.mrb[0].mxu1 }
  0xe6   :  { %v666_v43 = vmul.f32 %v1430_v40, %v1701_v39  ;;  %v698_v44 = vmul.f32 %v1462_v42, %v1701_v39  ;;  %v404_v45 = vpop.f32.mrb[1].mxu0  ;;  %v532_v46 = vpop.f32.mrb[1].mxu1 }
  0xe7   :  { %v664_v47 = vmul.f32 %v1701_v39, %v404_v45  ;;  %v696_v48 = vmul.f32 %v1701_v39, %v532_v46  ;;  %v1431_v49 = vpop.f32.mrb[2].mxu0  ;;  %v1463_v50 = vpop.f32.mrb[2].mxu1 }
  0xe8   :  { %v735_v51 = vadd.f32 %v1706_v41, %v666_v43  ;;  %v767_v52 = vadd.f32 %v1706_v41, %v698_v44  ;;  %v667_v53 = vmul.f32 %v1431_v49, %v1701_v39  ;;  %v699_v54 = vmul.f32 %v1463_v50, %v1701_v39  ;;  %v407_v55 = vpop.f32.mrb[3].mxu0  ;;  %v535_v56 = vpop.f32.mrb[3].mxu1 }
  0xe9   :  { %v733_v57 = vadd.f32 %v1706_v41, %v664_v47  ;;  %v765_v58 = vadd.f32 %v1706_v41, %v696_v48  ;;  %v665_v59 = vmul.f32 %v1701_v39, %v407_v55  ;;  %v697_v60 = vmul.f32 %v1701_v39, %v535_v56 }
  0xea   :  { %v799_v61 = vmax.f32 %v735_v51, 0.0  ;;  %v831_v62 = vmax.f32 %v767_v52, 0.0  ;;  %v736_v63 = vadd.f32 %v1706_v41, %v667_v53  ;;  %v768_v0 = vadd.f32 %v1706_v41, %v699_v54 }
  0xeb   :  { %v797_v1 = vmax.f32 %v733_v57, 0.0  ;;  %v829_v2 = vmax.f32 %v765_v58, 0.0  ;;  %v734_v3 = vadd.f32 %v1706_v41, %v665_v59  ;;  %v766_v4 = vadd.f32 %v1706_v41, %v697_v60 }
  0xec   :  { %v1322_v5 = vpack.c.bf16 %v799_v61, %v799_v61  ;;  %v1354_v6 = vpack.c.bf16 %v831_v62, %v831_v62  ;;  %v800_v7 = vmax.f32 %v736_v63, 0.0  ;;  %v832_v8 = vmax.f32 %v768_v0, 0.0 }
  0xed   :  { %v1320_v9 = vpack.c.bf16 %v797_v1, %v797_v1  ;;  %v1352_v10 = vpack.c.bf16 %v829_v2, %v829_v2  ;;  %v798_v11 = vmax.f32 %v734_v3, 0.0  ;;  %v830_v12 = vmax.f32 %v766_v4, 0.0  ;;  %v1434_v13 = vpop.f32.mrb[4].mxu0  ;;  %v1466_v14 = vpop.f32.mrb[4].mxu1 }
  0xee   :  { %1120 = vst.msk [vmem:[%s2095_s3 + $0x8] sm:$0xf] %vm1117_vm2, %v1322_v5  ;;  %1152 = vst.msk [vmem:[%s2095_s3 + $0x88] sm:$0xf] %vm1117_vm2, %v1354_v6  ;;  %v1323_v15 = vpack.c.bf16 %v800_v7, %v800_v7  ;;  %v1355_v16 = vpack.c.bf16 %v832_v8, %v832_v8  ;;  %v670_v17 = vmul.f32 %v1434_v13, %v1701_v39  ;;  %v420_v19 = vpop.f32.mrb[5].mxu0  ;;  %v548_v20 = vpop.f32.mrb[5].mxu1 }
  0xef   :  { %v702_v18 = vmul.f32 %v1466_v14, %v1701_v39  ;;  %1118 = vst.msk [vmem:[%s2095_s3] sm:$0xf] %vm1117_vm2, %v1320_v9  ;;  %1150 = vst.msk [vmem:[%s2095_s3 + $0x80] sm:$0xf] %vm1117_vm2, %v1352_v10  ;;  %v1321_v21 = vpack.c.bf16 %v798_v11, %v798_v11  ;;  %v1353_v22 = vpack.c.bf16 %v830_v12, %v830_v12  ;;  %v1435_v25 = vpop.f32.mrb[6].mxu0  ;;  %v1467_v26 = vpop.f32.mrb[6].mxu1 }
  0xf0   :  { %v668_v23 = vmul.f32 %v1701_v39, %v420_v19  ;;  %v700_v24 = vmul.f32 %v1701_v39, %v548_v20  ;;  %1121 = vst.msk [vmem:[%s2095_s3 + $0xc] sm:$0xf] %vm1117_vm2, %v1323_v15  ;;  %1153 = vst.msk [vmem:[%s2095_s3 + $0x8c] sm:$0xf] %vm1117_vm2, %v1355_v16  ;;  %v739_v27 = vadd.f32 %v1706_v41, %v670_v17  ;;  %v423_v31 = vpop.f32.mrb[7].mxu0  ;;  %v551_v32 = vpop.f32.mrb[7].mxu1 }
  0xf1   :  { %v771_v28 = vadd.f32 %v1706_v41, %v702_v18  ;;  %v671_v29 = vmul.f32 %v1435_v25, %v1701_v39  ;;  %v703_v30 = vmul.f32 %v1467_v26, %v1701_v39  ;;  %1119 = vst.msk [vmem:[%s2095_s3 + $0x4] sm:$0xf] %vm1117_vm2, %v1321_v21  ;;  %1151 = vst.msk [vmem:[%s2095_s3 + $0x84] sm:$0xf] %vm1117_vm2, %v1353_v22 }
  0xf2   :  { %v737_v33 = vadd.f32 %v1706_v41, %v668_v23  ;;  %v769_v34 = vadd.f32 %v1706_v41, %v700_v24  ;;  %v669_v35 = vmul.f32 %v1701_v39, %v423_v31  ;;  %v701_v36 = vmul.f32 %v1701_v39, %v551_v32 }
  0xf3   :  { %v803_v37 = vmax.f32 %v739_v27, 0.0  ;;  %v835_v38 = vmax.f32 %v771_v28, 0.0  ;;  %v740_v40 = vadd.f32 %v1706_v41, %v671_v29  ;;  %v772_v42 = vadd.f32 %v1706_v41, %v703_v30 }
  0xf4   :  { %v801_v43 = vmax.f32 %v737_v33, 0.0  ;;  %v833_v44 = vmax.f32 %v769_v34, 0.0  ;;  %v738_v45 = vadd.f32 %v1706_v41, %v669_v35  ;;  %v770_v46 = vadd.f32 %v1706_v41, %v701_v36 }
  0xf5   :  { %v1326_v47 = vpack.c.bf16 %v803_v37, %v803_v37  ;;  %v1358_v48 = vpack.c.bf16 %v835_v38, %v835_v38  ;;  %v804_v49 = vmax.f32 %v740_v40, 0.0  ;;  %v836_v50 = vmax.f32 %v772_v42, 0.0  ;;  %v1438_v55 = vpop.f32.mrb[8].mxu0  ;;  %v1470_v56 = vpop.f32.mrb[8].mxu1 }
  0xf6   :  { %v1324_v51 = vpack.c.bf16 %v801_v43, %v801_v43  ;;  %v1356_v52 = vpack.c.bf16 %v833_v44, %v833_v44  ;;  %v802_v53 = vmax.f32 %v738_v45, 0.0  ;;  %v834_v54 = vmax.f32 %v770_v46, 0.0  ;;  %v436_v61 = vpop.f32.mrb[9].mxu0  ;;  %v564_v62 = vpop.f32.mrb[9].mxu1 }
  0xf7   :  { %1124 = vst.msk [vmem:[%s2095_s3 + $0x18] sm:$0xf] %vm1117_vm2, %v1326_v47  ;;  %1156 = vst.msk [vmem:[%s2095_s3 + $0x98] sm:$0xf] %vm1117_vm2, %v1358_v48  ;;  %v1327_v57 = vpack.c.bf16 %v804_v49, %v804_v49  ;;  %v1359_v58 = vpack.c.bf16 %v836_v50, %v836_v50  ;;  %v674_v59 = vmul.f32 %v1438_v55, %v1701_v39  ;;  %v1439_v3 = vpop.f32.mrb[10].mxu0  ;;  %v1471_v4 = vpop.f32.mrb[10].mxu1 }
  0xf8   :  { %v706_v60 = vmul.f32 %v1470_v56, %v1701_v39  ;;  %1122 = vst.msk [vmem:[%s2095_s3 + $0x10] sm:$0xf] %vm1117_vm2, %v1324_v51  ;;  %1154 = vst.msk [vmem:[%s2095_s3 + $0x90] sm:$0xf] %vm1117_vm2, %v1356_v52  ;;  %v1325_v63 = vpack.c.bf16 %v802_v53, %v802_v53  ;;  %v1357_v0 = vpack.c.bf16 %v834_v54, %v834_v54  ;;  %v439_v9 = vpop.f32.mrb[11].mxu0  ;;  %v567_v10 = vpop.f32.mrb[11].mxu1 }
  0xf9   :  { %v672_v1 = vmul.f32 %v1701_v39, %v436_v61  ;;  %v704_v2 = vmul.f32 %v1701_v39, %v564_v62  ;;  %1125 = vst.msk [vmem:[%s2095_s3 + $0x1c] sm:$0xf] %vm1117_vm2, %v1327_v57  ;;  %1157 = vst.msk [vmem:[%s2095_s3 + $0x9c] sm:$0xf] %vm1117_vm2, %v1359_v58  ;;  %v743_v5 = vadd.f32 %v1706_v41, %v674_v59 }
  0xfa   :  { %v775_v6 = vadd.f32 %v1706_v41, %v706_v60  ;;  %v675_v7 = vmul.f32 %v1439_v3, %v1701_v39  ;;  %v707_v8 = vmul.f32 %v1471_v4, %v1701_v39  ;;  %1123 = vst.msk [vmem:[%s2095_s3 + $0x14] sm:$0xf] %vm1117_vm2, %v1325_v63  ;;  %1155 = vst.msk [vmem:[%s2095_s3 + $0x94] sm:$0xf] %vm1117_vm2, %v1357_v0 }
  0xfb   :  { %v741_v11 = vadd.f32 %v1706_v41, %v672_v1  ;;  %v773_v12 = vadd.f32 %v1706_v41, %v704_v2  ;;  %v673_v13 = vmul.f32 %v1701_v39, %v439_v9  ;;  %v705_v14 = vmul.f32 %v1701_v39, %v567_v10 }
  0xfc   :  { %v807_v15 = vmax.f32 %v743_v5, 0.0  ;;  %v839_v16 = vmax.f32 %v775_v6, 0.0  ;;  %v744_v17 = vadd.f32 %v1706_v41, %v675_v7  ;;  %v776_v18 = vadd.f32 %v1706_v41, %v707_v8 }
  0xfd   :  { %v805_v19 = vmax.f32 %v741_v11, 0.0  ;;  %v837_v20 = vmax.f32 %v773_v12, 0.0  ;;  %v742_v21 = vadd.f32 %v1706_v41, %v673_v13  ;;  %v774_v22 = vadd.f32 %v1706_v41, %v705_v14  ;;  %v1442_v31 = vpop.f32.mrb[12].mxu0  ;;  %v1474_v32 = vpop.f32.mrb[12].mxu1 }
  0xfe   :  { %v1330_v23 = vpack.c.bf16 %v807_v15, %v807_v15  ;;  %v1362_v24 = vpack.c.bf16 %v839_v16, %v839_v16  ;;  %v808_v25 = vmax.f32 %v744_v17, 0.0  ;;  %v840_v26 = vmax.f32 %v776_v18, 0.0  ;;  %v452_v37 = vpop.f32.mrb[13].mxu0  ;;  %v580_v38 = vpop.f32.mrb[13].mxu1 }
  0xff   :  { %v1328_v27 = vpack.c.bf16 %v805_v19, %v805_v19  ;;  %v1360_v28 = vpack.c.bf16 %v837_v20, %v837_v20  ;;  %v806_v29 = vmax.f32 %v742_v21, 0.0  ;;  %v838_v30 = vmax.f32 %v774_v22, 0.0  ;;  %v1443_v45 = vpop.f32.mrb[14].mxu0  ;;  %v1475_v46 = vpop.f32.mrb[14].mxu1 }
 0x100   :  { %1128 = vst.msk [vmem:[%s2095_s3 + $0x28] sm:$0xf] %vm1117_vm2, %v1330_v23  ;;  %1160 = vst.msk [vmem:[%s2095_s3 + $0xa8] sm:$0xf] %vm1117_vm2, %v1362_v24  ;;  %v1331_v33 = vpack.c.bf16 %v808_v25, %v808_v25  ;;  %v1363_v34 = vpack.c.bf16 %v840_v26, %v840_v26  ;;  %v678_v35 = vmul.f32 %v1442_v31, %v1701_v39  ;;  %v455_v51 = vpop.f32.mrb[15].mxu0  ;;  %v583_v52 = vpop.f32.mrb[15].mxu1 }
 0x101   :  { %v710_v36 = vmul.f32 %v1474_v32, %v1701_v39  ;;  %1126 = vst.msk [vmem:[%s2095_s3 + $0x20] sm:$0xf] %vm1117_vm2, %v1328_v27  ;;  %1158 = vst.msk [vmem:[%s2095_s3 + $0xa0] sm:$0xf] %vm1117_vm2, %v1360_v28  ;;  %v1329_v40 = vpack.c.bf16 %v806_v29, %v806_v29  ;;  %v1361_v42 = vpack.c.bf16 %v838_v30, %v838_v30 }
 0x102   :  { %v676_v43 = vmul.f32 %v1701_v39, %v452_v37  ;;  %v708_v44 = vmul.f32 %v1701_v39, %v580_v38  ;;  %1129 = vst.msk [vmem:[%s2095_s3 + $0x2c] sm:$0xf] %vm1117_vm2, %v1331_v33  ;;  %1161 = vst.msk [vmem:[%s2095_s3 + $0xac] sm:$0xf] %vm1117_vm2, %v1363_v34  ;;  %v747_v47 = vadd.f32 %v1706_v41, %v678_v35 }
 0x103   :  { %v779_v48 = vadd.f32 %v1706_v41, %v710_v36  ;;  %v679_v49 = vmul.f32 %v1443_v45, %v1701_v39  ;;  %v711_v50 = vmul.f32 %v1475_v46, %v1701_v39  ;;  %1127 = vst.msk [vmem:[%s2095_s3 + $0x24] sm:$0xf] %vm1117_vm2, %v1329_v40  ;;  %1159 = vst.msk [vmem:[%s2095_s3 + $0xa4] sm:$0xf] %vm1117_vm2, %v1361_v42 }
 0x104   :  { %v745_v53 = vadd.f32 %v1706_v41, %v676_v43  ;;  %v777_v54 = vadd.f32 %v1706_v41, %v708_v44  ;;  %v677_v55 = vmul.f32 %v1701_v39, %v455_v51  ;;  %v709_v56 = vmul.f32 %v1701_v39, %v583_v52 }
 0x105   :  { %v811_v57 = vmax.f32 %v747_v47, 0.0  ;;  %v843_v58 = vmax.f32 %v779_v48, 0.0  ;;  %v748_v59 = vadd.f32 %v1706_v41, %v679_v49  ;;  %v780_v60 = vadd.f32 %v1706_v41, %v711_v50  ;;  %v1446_v9 = vpop.f32.mrb[16].mxu0  ;;  %v1478_v10 = vpop.f32.mrb[16].mxu1 }
 0x106   :  { %v809_v61 = vmax.f32 %v745_v53, 0.0  ;;  %v841_v62 = vmax.f32 %v777_v54, 0.0  ;;  %v746_v63 = vadd.f32 %v1706_v41, %v677_v55  ;;  %v778_v0 = vadd.f32 %v1706_v41, %v709_v56  ;;  %v468_v15 = vpop.f32.mrb[17].mxu0  ;;  %v596_v16 = vpop.f32.mrb[17].mxu1 }
 0x107   :  { %v1334_v1 = vpack.c.bf16 %v811_v57, %v811_v57  ;;  %v1366_v2 = vpack.c.bf16 %v843_v58, %v843_v58  ;;  %v812_v3 = vmax.f32 %v748_v59, 0.0  ;;  %v844_v4 = vmax.f32 %v780_v60, 0.0  ;;  %v1447_v21 = vpop.f32.mrb[18].mxu0  ;;  %v1479_v22 = vpop.f32.mrb[18].mxu1 }
 0x108   :  { %v1332_v5 = vpack.c.bf16 %v809_v61, %v809_v61  ;;  %v1364_v6 = vpack.c.bf16 %v841_v62, %v841_v62  ;;  %v810_v7 = vmax.f32 %v746_v63, 0.0  ;;  %v842_v8 = vmax.f32 %v778_v0, 0.0  ;;  %v471_v27 = vpop.f32.mrb[19].mxu0  ;;  %v599_v28 = vpop.f32.mrb[19].mxu1 }
 0x109   :  { %1132 = vst.msk [vmem:[%s2095_s3 + $0x38] sm:$0xf] %vm1117_vm2, %v1334_v1  ;;  %1164 = vst.msk [vmem:[%s2095_s3 + $0xb8] sm:$0xf] %vm1117_vm2, %v1366_v2  ;;  %v1335_v11 = vpack.c.bf16 %v812_v3, %v812_v3  ;;  %v1367_v12 = vpack.c.bf16 %v844_v4, %v844_v4  ;;  %v682_v13 = vmul.f32 %v1446_v9, %v1701_v39 }
 0x10a   :  { %v714_v14 = vmul.f32 %v1478_v10, %v1701_v39  ;;  %1130 = vst.msk [vmem:[%s2095_s3 + $0x30] sm:$0xf] %vm1117_vm2, %v1332_v5  ;;  %1162 = vst.msk [vmem:[%s2095_s3 + $0xb0] sm:$0xf] %vm1117_vm2, %v1364_v6  ;;  %v1333_v17 = vpack.c.bf16 %v810_v7, %v810_v7  ;;  %v1365_v18 = vpack.c.bf16 %v842_v8, %v842_v8 }
 0x10b   :  { %v680_v19 = vmul.f32 %v1701_v39, %v468_v15  ;;  %v712_v20 = vmul.f32 %v1701_v39, %v596_v16  ;;  %1133 = vst.msk [vmem:[%s2095_s3 + $0x3c] sm:$0xf] %vm1117_vm2, %v1335_v11  ;;  %1165 = vst.msk [vmem:[%s2095_s3 + $0xbc] sm:$0xf] %vm1117_vm2, %v1367_v12  ;;  %v751_v23 = vadd.f32 %v1706_v41, %v682_v13 }
 0x10c   :  { %v783_v24 = vadd.f32 %v1706_v41, %v714_v14  ;;  %v683_v25 = vmul.f32 %v1447_v21, %v1701_v39  ;;  %v715_v26 = vmul.f32 %v1479_v22, %v1701_v39  ;;  %1131 = vst.msk [vmem:[%s2095_s3 + $0x34] sm:$0xf] %vm1117_vm2, %v1333_v17  ;;  %1163 = vst.msk [vmem:[%s2095_s3 + $0xb4] sm:$0xf] %vm1117_vm2, %v1365_v18 }
 0x10d   :  { %v749_v29 = vadd.f32 %v1706_v41, %v680_v19  ;;  %v781_v30 = vadd.f32 %v1706_v41, %v712_v20  ;;  %v681_v31 = vmul.f32 %v1701_v39, %v471_v27  ;;  %v713_v32 = vmul.f32 %v1701_v39, %v599_v28  ;;  %v1450_v51 = vpop.f32.mrb[20].mxu0  ;;  %v1482_v52 = vpop.f32.mrb[20].mxu1 }
 0x10e   :  { %v815_v33 = vmax.f32 %v751_v23, 0.0  ;;  %v847_v34 = vmax.f32 %v783_v24, 0.0  ;;  %v752_v35 = vadd.f32 %v1706_v41, %v683_v25  ;;  %v784_v36 = vadd.f32 %v1706_v41, %v715_v26  ;;  %v484_v57 = vpop.f32.mrb[21].mxu0  ;;  %v612_v58 = vpop.f32.mrb[21].mxu1 }
 0x10f   :  { %v813_v37 = vmax.f32 %v749_v29, 0.0  ;;  %v845_v38 = vmax.f32 %v781_v30, 0.0  ;;  %v750_v40 = vadd.f32 %v1706_v41, %v681_v31  ;;  %v782_v42 = vadd.f32 %v1706_v41, %v713_v32  ;;  %v1451_v63 = vpop.f32.mrb[22].mxu0  ;;  %v1483_v0 = vpop.f32.mrb[22].mxu1 }
 0x110   :  { %v1338_v43 = vpack.c.bf16 %v815_v33, %v815_v33  ;;  %v1370_v44 = vpack.c.bf16 %v847_v34, %v847_v34  ;;  %v816_v45 = vmax.f32 %v752_v35, 0.0  ;;  %v848_v46 = vmax.f32 %v784_v36, 0.0  ;;  %v487_v5 = vpop.f32.mrb[23].mxu0  ;;  %v615_v6 = vpop.f32.mrb[23].mxu1 }
 0x111   :  { %v1336_v47 = vpack.c.bf16 %v813_v37, %v813_v37  ;;  %v1368_v48 = vpack.c.bf16 %v845_v38, %v845_v38  ;;  %v814_v49 = vmax.f32 %v750_v40, 0.0  ;;  %v846_v50 = vmax.f32 %v782_v42, 0.0 }
 0x112   :  { %1136 = vst.msk [vmem:[%s2095_s3 + $0x48] sm:$0xf] %vm1117_vm2, %v1338_v43  ;;  %1168 = vst.msk [vmem:[%s2095_s3 + $0xc8] sm:$0xf] %vm1117_vm2, %v1370_v44  ;;  %v1339_v53 = vpack.c.bf16 %v816_v45, %v816_v45  ;;  %v1371_v54 = vpack.c.bf16 %v848_v46, %v848_v46  ;;  %v686_v55 = vmul.f32 %v1450_v51, %v1701_v39 }
 0x113   :  { %v718_v56 = vmul.f32 %v1482_v52, %v1701_v39  ;;  %1134 = vst.msk [vmem:[%s2095_s3 + $0x40] sm:$0xf] %vm1117_vm2, %v1336_v47  ;;  %1166 = vst.msk [vmem:[%s2095_s3 + $0xc0] sm:$0xf] %vm1117_vm2, %v1368_v48  ;;  %v1337_v59 = vpack.c.bf16 %v814_v49, %v814_v49  ;;  %v1369_v60 = vpack.c.bf16 %v846_v50, %v846_v50 }
 0x114   :  { %v684_v61 = vmul.f32 %v1701_v39, %v484_v57  ;;  %v716_v62 = vmul.f32 %v1701_v39, %v612_v58  ;;  %1137 = vst.msk [vmem:[%s2095_s3 + $0x4c] sm:$0xf] %vm1117_vm2, %v1339_v53  ;;  %1169 = vst.msk [vmem:[%s2095_s3 + $0xcc] sm:$0xf] %vm1117_vm2, %v1371_v54  ;;  %v755_v1 = vadd.f32 %v1706_v41, %v686_v55 }
 0x115   :  { %v787_v2 = vadd.f32 %v1706_v41, %v718_v56  ;;  %v687_v3 = vmul.f32 %v1451_v63, %v1701_v39  ;;  %v719_v4 = vmul.f32 %v1483_v0, %v1701_v39  ;;  %1135 = vst.msk [vmem:[%s2095_s3 + $0x44] sm:$0xf] %vm1117_vm2, %v1337_v59  ;;  %1167 = vst.msk [vmem:[%s2095_s3 + $0xc4] sm:$0xf] %vm1117_vm2, %v1369_v60  ;;  %v1454_v27 = vpop.f32.mrb[24].mxu0  ;;  %v1486_v28 = vpop.f32.mrb[24].mxu1 }
 0x116   :  { %v753_v7 = vadd.f32 %v1706_v41, %v684_v61  ;;  %v785_v8 = vadd.f32 %v1706_v41, %v716_v62  ;;  %v685_v9 = vmul.f32 %v1701_v39, %v487_v5  ;;  %v717_v10 = vmul.f32 %v1701_v39, %v615_v6  ;;  %v500_v33 = vpop.f32.mrb[25].mxu0  ;;  %v628_v34 = vpop.f32.mrb[25].mxu1 }
 0x117   :  { %v819_v11 = vmax.f32 %v755_v1, 0.0  ;;  %v851_v12 = vmax.f32 %v787_v2, 0.0  ;;  %v756_v13 = vadd.f32 %v1706_v41, %v687_v3  ;;  %v788_v14 = vadd.f32 %v1706_v41, %v719_v4  ;;  %v1455_v40 = vpop.f32.mrb[26].mxu0  ;;  %v1487_v42 = vpop.f32.mrb[26].mxu1 }
 0x118   :  { %v817_v15 = vmax.f32 %v753_v7, 0.0  ;;  %v849_v16 = vmax.f32 %v785_v8, 0.0  ;;  %v754_v17 = vadd.f32 %v1706_v41, %v685_v9  ;;  %v786_v18 = vadd.f32 %v1706_v41, %v717_v10  ;;  %v503_v47 = vpop.f32.mrb[27].mxu0  ;;  %v631_v48 = vpop.f32.mrb[27].mxu1 }
 0x119   :  { %v1342_v19 = vpack.c.bf16 %v819_v11, %v819_v11  ;;  %v1374_v20 = vpack.c.bf16 %v851_v12, %v851_v12  ;;  %v820_v21 = vmax.f32 %v756_v13, 0.0  ;;  %v852_v22 = vmax.f32 %v788_v14, 0.0 }
 0x11a   :  { %v1340_v23 = vpack.c.bf16 %v817_v15, %v817_v15  ;;  %v1372_v24 = vpack.c.bf16 %v849_v16, %v849_v16  ;;  %v818_v25 = vmax.f32 %v754_v17, 0.0  ;;  %v850_v26 = vmax.f32 %v786_v18, 0.0 }
 0x11b   :  { %1140 = vst.msk [vmem:[%s2095_s3 + $0x58] sm:$0xf] %vm1117_vm2, %v1342_v19  ;;  %1172 = vst.msk [vmem:[%s2095_s3 + $0xd8] sm:$0xf] %vm1117_vm2, %v1374_v20  ;;  %v1343_v29 = vpack.c.bf16 %v820_v21, %v820_v21  ;;  %v1375_v30 = vpack.c.bf16 %v852_v22, %v852_v22  ;;  %v690_v31 = vmul.f32 %v1454_v27, %v1701_v39 }
 0x11c   :  { %v722_v32 = vmul.f32 %v1486_v28, %v1701_v39  ;;  %1138 = vst.msk [vmem:[%s2095_s3 + $0x50] sm:$0xf] %vm1117_vm2, %v1340_v23  ;;  %1170 = vst.msk [vmem:[%s2095_s3 + $0xd0] sm:$0xf] %vm1117_vm2, %v1372_v24  ;;  %v1341_v35 = vpack.c.bf16 %v818_v25, %v818_v25  ;;  %v1373_v36 = vpack.c.bf16 %v850_v26, %v850_v26 }
 0x11d   :  { %v688_v37 = vmul.f32 %v1701_v39, %v500_v33  ;;  %v720_v38 = vmul.f32 %v1701_v39, %v628_v34  ;;  %1141 = vst.msk [vmem:[%s2095_s3 + $0x5c] sm:$0xf] %vm1117_vm2, %v1343_v29  ;;  %1173 = vst.msk [vmem:[%s2095_s3 + $0xdc] sm:$0xf] %vm1117_vm2, %v1375_v30  ;;  %v759_v43 = vadd.f32 %v1706_v41, %v690_v31  ;;  %v1458_v5 = vpop.f32.mrb[28].mxu0  ;;  %v1490_v6 = vpop.f32.mrb[28].mxu1 }
 0x11e   :  { %v791_v44 = vadd.f32 %v1706_v41, %v722_v32  ;;  %v691_v45 = vmul.f32 %v1455_v40, %v1701_v39  ;;  %v723_v46 = vmul.f32 %v1487_v42, %v1701_v39  ;;  %1139 = vst.msk [vmem:[%s2095_s3 + $0x54] sm:$0xf] %vm1117_vm2, %v1341_v35  ;;  %1171 = vst.msk [vmem:[%s2095_s3 + $0xd4] sm:$0xf] %vm1117_vm2, %v1373_v36  ;;  %v516_v11 = vpop.f32.mrb[29].mxu0  ;;  %v644_v12 = vpop.f32.mrb[29].mxu1 }
 0x11f   :  { %v757_v49 = vadd.f32 %v1706_v41, %v688_v37  ;;  %v789_v50 = vadd.f32 %v1706_v41, %v720_v38  ;;  %v689_v51 = vmul.f32 %v1701_v39, %v503_v47  ;;  %v721_v52 = vmul.f32 %v1701_v39, %v631_v48  ;;  %v1459_v17 = vpop.f32.mrb[30].mxu0  ;;  %v1491_v18 = vpop.f32.mrb[30].mxu1 }
 0x120   :  { %v823_v53 = vmax.f32 %v759_v43, 0.0  ;;  %v855_v54 = vmax.f32 %v791_v44, 0.0  ;;  %v760_v55 = vadd.f32 %v1706_v41, %v691_v45  ;;  %v792_v56 = vadd.f32 %v1706_v41, %v723_v46  ;;  %v519_v23 = vpop.f32.mrb[31].mxu0  ;;  %v647_v24 = vpop.f32.mrb[31].mxu1 }
 0x121   :  { %v821_v57 = vmax.f32 %v757_v49, 0.0  ;;  %v853_v58 = vmax.f32 %v789_v50, 0.0  ;;  %v758_v59 = vadd.f32 %v1706_v41, %v689_v51  ;;  %v790_v60 = vadd.f32 %v1706_v41, %v721_v52 }
 0x122   :  { %v1346_v61 = vpack.c.bf16 %v823_v53, %v823_v53  ;;  %v1378_v62 = vpack.c.bf16 %v855_v54, %v855_v54  ;;  %v824_v63 = vmax.f32 %v760_v55, 0.0  ;;  %v856_v0 = vmax.f32 %v792_v56, 0.0 }
 0x123   :  { %v1344_v1 = vpack.c.bf16 %v821_v57, %v821_v57  ;;  %v1376_v2 = vpack.c.bf16 %v853_v58, %v853_v58  ;;  %v822_v3 = vmax.f32 %v758_v59, 0.0  ;;  %v854_v4 = vmax.f32 %v790_v60, 0.0 }
 0x124   :  { %1144 = vst.msk [vmem:[%s2095_s3 + $0x68] sm:$0xf] %vm1117_vm2, %v1346_v61  ;;  %1176 = vst.msk [vmem:[%s2095_s3 + $0xe8] sm:$0xf] %vm1117_vm2, %v1378_v62  ;;  %v1347_v7 = vpack.c.bf16 %v824_v63, %v824_v63  ;;  %v1379_v8 = vpack.c.bf16 %v856_v0, %v856_v0  ;;  %v694_v9 = vmul.f32 %v1458_v5, %v1701_v39 }
 0x125   :  { %v726_v10 = vmul.f32 %v1490_v6, %v1701_v39  ;;  %1142 = vst.msk [vmem:[%s2095_s3 + $0x60] sm:$0xf] %vm1117_vm2, %v1344_v1  ;;  %1174 = vst.msk [vmem:[%s2095_s3 + $0xe0] sm:$0xf] %vm1117_vm2, %v1376_v2  ;;  %v1345_v13 = vpack.c.bf16 %v822_v3, %v822_v3  ;;  %v1377_v14 = vpack.c.bf16 %v854_v4, %v854_v4 }
 0x126   :  { %v692_v15 = vmul.f32 %v1701_v39, %v516_v11  ;;  %v724_v16 = vmul.f32 %v1701_v39, %v644_v12  ;;  %1145 = vst.msk [vmem:[%s2095_s3 + $0x6c] sm:$0xf] %vm1117_vm2, %v1347_v7  ;;  %1177 = vst.msk [vmem:[%s2095_s3 + $0xec] sm:$0xf] %vm1117_vm2, %v1379_v8  ;;  %v763_v19 = vadd.f32 %v1706_v41, %v694_v9 }
 0x127   :  { %v795_v20 = vadd.f32 %v1706_v41, %v726_v10  ;;  %v695_v21 = vmul.f32 %v1459_v17, %v1701_v39  ;;  %v727_v22 = vmul.f32 %v1491_v18, %v1701_v39  ;;  %1143 = vst.msk [vmem:[%s2095_s3 + $0x64] sm:$0xf] %vm1117_vm2, %v1345_v13  ;;  %1175 = vst.msk [vmem:[%s2095_s3 + $0xe4] sm:$0xf] %vm1117_vm2, %v1377_v14 }
 0x128   :  { %v761_v25 = vadd.f32 %v1706_v41, %v692_v15  ;;  %v793_v26 = vadd.f32 %v1706_v41, %v724_v16  ;;  %v693_v27 = vmul.f32 %v1701_v39, %v519_v23  ;;  %v725_v28 = vmul.f32 %v1701_v39, %v647_v24 }
 0x129   :  { %v827_v29 = vmax.f32 %v763_v19, 0.0  ;;  %v859_v30 = vmax.f32 %v795_v20, 0.0  ;;  %v764_v31 = vadd.f32 %v1706_v41, %v695_v21  ;;  %v796_v32 = vadd.f32 %v1706_v41, %v727_v22 }
 0x12a   :  { %v825_v33 = vmax.f32 %v761_v25, 0.0  ;;  %v857_v34 = vmax.f32 %v793_v26, 0.0  ;;  %v762_v35 = vadd.f32 %v1706_v41, %v693_v27  ;;  %v794_v36 = vadd.f32 %v1706_v41, %v725_v28 }
 0x12b   :  { %v1350_v37 = vpack.c.bf16 %v827_v29, %v827_v29  ;;  %v1382_v38 = vpack.c.bf16 %v859_v30, %v859_v30  ;;  %v828_v40 = vmax.f32 %v764_v31, 0.0  ;;  %v860_v42 = vmax.f32 %v796_v32, 0.0 }
 0x12c   :  { %v1348_v43 = vpack.c.bf16 %v825_v33, %v825_v33  ;;  %v1380_v44 = vpack.c.bf16 %v857_v34, %v857_v34  ;;  %v826_v45 = vmax.f32 %v762_v35, 0.0  ;;  %v858_v39 = vmax.f32 %v794_v36, 0.0 }
 0x12d   :  { %1148 = vst.msk [vmem:[%s2095_s3 + $0x78] sm:$0xf] %vm1117_vm2, %v1350_v37  ;;  %1180 = vst.msk [vmem:[%s2095_s3 + $0xf8] sm:$0xf] %vm1117_vm2, %v1382_v38  ;;  %v1351_v46 = vpack.c.bf16 %v828_v40, %v828_v40  ;;  %v1383_v41 = vpack.c.bf16 %v860_v42, %v860_v42 }
 0x12e   :  { %1146 = vst.msk [vmem:[%s2095_s3 + $0x70] sm:$0xf] %vm1117_vm2, %v1348_v43  ;;  %1178 = vst.msk [vmem:[%s2095_s3 + $0xf0] sm:$0xf] %vm1117_vm2, %v1380_v44  ;;  %v1349_v47 = vpack.c.bf16 %v826_v45, %v826_v45  ;;  %v1381_v48 = vpack.c.bf16 %v858_v39, %v858_v39 }
 0x12f   :  { %1149 = vst.msk [vmem:[%s2095_s3 + $0x7c] sm:$0xf] %vm1117_vm2, %v1351_v46  ;;  %1181 = vst.msk [vmem:[%s2095_s3 + $0xfc] sm:$0xf] %vm1117_vm2, %v1383_v41 }
 0x130   :  { %1147 = vst.msk [vmem:[%s2095_s3 + $0x74] sm:$0xf] %vm1117_vm2, %v1349_v47  ;;  %1179 = vst.msk [vmem:[%s2095_s3 + $0xf4] sm:$0xf] %vm1117_vm2, %v1381_v48 }

</bundles_post_ra>
